<compile_context>
chip_gen: v7x
topology: tpu7x:2x2x1
jax: 0.10.0
libtpu: 0.0.40
codegen_flags: <defaults>
</compile_context>

<pallas_src>
import functools

import jax
import jax.numpy as jnp
from jax import lax
from jax.experimental import pallas as pl
from jax.experimental.pallas import tpu as pltpu

_LANE = 128  # pad every feature axis to one full lane group


def _rollout_kernel(x_ref, h1_ref, h2_ref,
                    wih1_ref, whh1_ref, b1_ref,
                    wih2_ref, whh2_ref, b2_ref,
                    wlin_ref, blin_ref,
                    outs_ref, h1o_ref, h2o_ref,
                    *, steps, feed_back):
    """Runs the full `steps`-long rollout inside one kernel invocation."""
    # Load weights (bf16) / biases (f32) once; resident for the whole rollout.
    wih1 = wih1_ref[...]
    whh1 = whh1_ref[...]
    wih2 = wih2_ref[...]
    whh2 = whh2_ref[...]
    wlin = wlin_ref[...]
    b1 = b1_ref[...]
    b2 = b2_ref[...]
    blin = blin_ref[...]

    def mm(a, w):
        # bf16 operands on the MXU, f32 accumulation.
        return jnp.dot(a.astype(jnp.bfloat16), w,
                       preferred_element_type=jnp.float32)

    def step(t, carry):
        inp, h1, h2 = carry                                  # f32 (1, 128) each
        # hh-side contractions depend only on the previous step's state, so
        # the scheduler can overlap them with the serial chain (perf #9).
        hh1 = mm(h1, whh1)
        hh2 = mm(h2, whh2)
        h1n = jnp.tanh(mm(inp, wih1) + hh1 + b1)             # RNNCell 1
        h2n = jnp.tanh(mm(h1n, wih2) + hh2 + b2)             # RNNCell 2
        out = mm(h2n, wlin) + blin                           # Linear head
        # Lane-dense per-step output row into the resident output slab.
        outs_ref[pl.ds(t, 1), :] = out
        nxt = out if feed_back else inp                      # predict() feedback
        return (nxt, h1n, h2n)

    carry0 = (x_ref[...], h1_ref[...], h2_ref[...])
    _, h1, h2 = lax.fori_loop(0, steps, step, carry0, unroll=min(steps, 8))

    # Final hidden states written once (perf #4), not every step.
    h1o_ref[...] = h1
    h2o_ref[...] = h2


def _pad_lanes(a, target):
    pad = target - a.shape[-1]
    return jnp.pad(a, ((0, 0), (0, pad))) if pad > 0 else a


def rnn_rollout(x, h1, h2, params, steps):
    """Runs `steps` chained forward() calls in a single gridless pallas_call.

    Step 0 consumes `x`; later steps feed the previous output back in
    (i.e. predict()).  Returns (outputs (steps, output_size), new_h_t,
    new_h_t2), all unpadded, f32.
    """
    (wih1, whh1, b1, wih2, whh2, b2, wlin, blin, sizes) = params
    input_size, hidden_size, output_size = sizes
    B = x.shape[0]
    assert B == 1, "module hard-codes batch_size = 1 for its hidden state"
    assert steps >= 1
    feed_back = steps > 1
    if feed_back:
        assert output_size == input_size, "predict() feeds output back as input"
    # Keep the resident output slab well inside scoped VMEM on every chip.
    assert steps * _LANE * 4 <= 16 * 1024 * 1024, "chunk outputs for long rollouts"

    xp = _pad_lanes(x.astype(jnp.float32), _LANE)
    h1p = _pad_lanes(h1.astype(jnp.float32), _LANE)
    h2p = _pad_lanes(h2.astype(jnp.float32), _LANE)

    vmem = pl.BlockSpec(memory_space=pltpu.MemorySpace.VMEM)
    out_shapes = (
        jax.ShapeDtypeStruct((steps, _LANE), jnp.float32),   # per-step outputs
        jax.ShapeDtypeStruct((B, _LANE), jnp.float32),       # new h_t
        jax.ShapeDtypeStruct((B, _LANE), jnp.float32),       # new h_t2
    )

    kernel = functools.partial(_rollout_kernel, steps=steps, feed_back=feed_back)
    outs, h1n, h2n = pl.pallas_call(
        kernel,
        out_shape=out_shapes,
        in_specs=[vmem] * 11,
        out_specs=(vmem, vmem, vmem),
    )(xp, h1p, h2p, wih1, whh1, b1, wih2, whh2, b2, wlin, blin)

    return (outs[:, :output_size],
            h1n[:, :hidden_size],
            h2n[:, :hidden_size])


def init_params(key, input_size, hidden_size, output_size):
    """PyTorch-style uniform init (independent keys per tensor), pre-transposed
    to (in, out), zero-padded to the 128-lane layout and cast to bf16 (weights
    only; biases stay f32)."""
    ks = jax.random.split(key, 10)
    bound = 1.0 / (hidden_size ** 0.5)

    def u(k, shape):
        return jax.random.uniform(k, shape, jnp.float32, -bound, bound)

    wih1 = u(ks[0], (input_size, hidden_size))
    whh1 = u(ks[1], (hidden_size, hidden_size))
    bih1 = u(ks[2], (1, hidden_size))
    bhh1 = u(ks[3], (1, hidden_size))
    wih2 = u(ks[4], (hidden_size, hidden_size))
    whh2 = u(ks[5], (hidden_size, hidden_size))
    bih2 = u(ks[6], (1, hidden_size))
    bhh2 = u(ks[7], (1, hidden_size))
    wlin = u(ks[8], (hidden_size, output_size))
    blin = u(ks[9], (1, output_size))

    def padw(a):  # (in, out) -> zero-padded (128, 128), bf16
        w = jnp.zeros((_LANE, _LANE), jnp.float32)
        return w.at[:a.shape[0], :a.shape[1]].set(a).astype(jnp.bfloat16)

    def padb(a):  # (1, out) -> zero-padded (1, 128), f32
        b = jnp.zeros((1, _LANE), jnp.float32)
        return b.at[:, :a.shape[1]].set(a)

    padded = (padw(wih1), padw(whh1), padb(bih1 + bhh1),
              padw(wih2), padw(whh2), padb(bih2 + bhh2),
              padw(wlin), padb(blin),
              (input_size, hidden_size, output_size))
    raw = (wih1, whh1, bih1 + bhh1, wih2, whh2, bih2 + bhh2, wlin, blin)
    return padded, raw


def reference_rollout(x, h1, h2, raw_params, steps, matmul_dtype=jnp.float32):
    """Pure-JAX reference of the same math (unpadded).  With
    matmul_dtype=bfloat16 it reproduces the kernel's bf16-operand matmuls."""
    wih1, whh1, b1, wih2, whh2, b2, wlin, blin = raw_params

    def mm(a, w):
        return jnp.dot(a.astype(matmul_dtype), w.astype(matmul_dtype),
                       preferred_element_type=jnp.float32)

    outs = []
    inp = x
    for _ in range(steps):
        h1 = jnp.tanh(mm(inp, wih1) + mm(h1, whh1) + b1)
        h2 = jnp.tanh(mm(h1, wih2) + mm(h2, whh2) + b2)
        out = mm(h2, wlin) + blin
        outs.append(out)
        inp = out
    return jnp.concatenate(outs, axis=0), h1, h2


def _check(name, got, want, atol, rtol):
    assert jnp.allclose(got, want, atol=atol, rtol=rtol), (
        f"{name} mismatch: max abs err "
        f"{float(jnp.max(jnp.abs(got - want))):.3e}")


if __name__ == "__main__":
    # Small shapes consistent with the module (batch is hard-coded to 1;
    # output_size == input_size so predict() can feed outputs back in).
    batch_size = 1
    input_size = 8
    hidden_size = 32
    output_size = 8
    steps = 3

    key = jax.random.PRNGKey(0)
    k_x, k_p = jax.random.split(key)

    params, raw = init_params(k_p, input_size, hidden_size, output_size)
    x = jax.random.normal(k_x, (batch_size, input_size), jnp.float32)
    h_t = jnp.zeros((batch_size, hidden_size), jnp.float32)
    h_t2 = jnp.zeros((batch_size, hidden_size), jnp.float32)

    # forward(): a single step through the fused kernel.
    out1, h1_1, h2_1 = jax.block_until_ready(
        rnn_rollout(x, h_t, h_t2, params, steps=1))
    # Tight check vs a reference that uses the same bf16 matmul operands.
    r_o, r_h1, r_h2 = reference_rollout(x, h_t, h_t2, raw, 1, jnp.bfloat16)
    _check("forward out (bf16 ref)", out1, r_o, 5e-3, 5e-3)
    _check("forward h_t (bf16 ref)", h1_1, r_h1, 5e-3, 5e-3)
    _check("forward h_t2 (bf16 ref)", h2_1, r_h2, 5e-3, 5e-3)
    # Loose sanity check vs the full-f32 reference (bf16 matmul operands relax
    # the match to the f32/f64 module math, as anticipated by the perf review).
    f_o, f_h1, f_h2 = reference_rollout(x, h_t, h_t2, raw, 1, jnp.float32)
    _check("forward out (f32 ref)", out1, f_o, 5e-2, 5e-2)

    # predict(x, steps=3): the whole rollout is ONE pallas_call.
    outs, h1_f, h2_f = jax.block_until_ready(
        rnn_rollout(x, h_t, h_t2, params, steps=steps))
    r_os, r_h1f, r_h2f = reference_rollout(x, h_t, h_t2, raw, steps, jnp.bfloat16)
    _check("predict outs (bf16 ref)", outs, r_os, 5e-3, 5e-3)
    _check("predict h_t (bf16 ref)", h1_f, r_h1f, 5e-3, 5e-3)
    _check("predict h_t2 (bf16 ref)", h2_f, r_h2f, 5e-3, 5e-3)
    f_os, f_h1f, f_h2f = reference_rollout(x, h_t, h_t2, raw, steps, jnp.float32)
    _check("predict outs (f32 ref)", outs, f_os, 5e-2, 5e-2)

    print("KERNEL_OK")
</pallas_src>

<mosaic_0001>
module attributes {stable_mosaic.version = 11 : i64} {
  func.func @_rollout_kernel(%arg0: memref<1x128xf32, #tpu.memory_space<vmem>>, %arg1: memref<1x128xf32, #tpu.memory_space<vmem>>, %arg2: memref<1x128xf32, #tpu.memory_space<vmem>>, %arg3: memref<128x128xbf16, #tpu.memory_space<vmem>>, %arg4: memref<128x128xbf16, #tpu.memory_space<vmem>>, %arg5: memref<1x128xf32, #tpu.memory_space<vmem>>, %arg6: memref<128x128xbf16, #tpu.memory_space<vmem>>, %arg7: memref<128x128xbf16, #tpu.memory_space<vmem>>, %arg8: memref<1x128xf32, #tpu.memory_space<vmem>>, %arg9: memref<128x128xbf16, #tpu.memory_space<vmem>>, %arg10: memref<1x128xf32, #tpu.memory_space<vmem>>, %arg11: memref<1x128xf32, #tpu.memory_space<vmem>>, %arg12: memref<1x128xf32, #tpu.memory_space<vmem>>, %arg13: memref<1x128xf32, #tpu.memory_space<vmem>>) attributes {dimension_semantics = [], scalar_prefetch = 0 : i64, scratch_operands = 0 : i64, tpu.core_type = #tpu.core_type<tc>} {
    %c0 = arith.constant 0 : index
    %c0_0 = arith.constant 0 : index
    %0 = vector.load %arg3[%c0, %c0_0] : memref<128x128xbf16, #tpu.memory_space<vmem>>, vector<128x128xbf16>
    %c0_1 = arith.constant 0 : index
    %c0_2 = arith.constant 0 : index
    %1 = vector.load %arg4[%c0_1, %c0_2] : memref<128x128xbf16, #tpu.memory_space<vmem>>, vector<128x128xbf16>
    %c0_3 = arith.constant 0 : index
    %c0_4 = arith.constant 0 : index
    %2 = vector.load %arg6[%c0_3, %c0_4] : memref<128x128xbf16, #tpu.memory_space<vmem>>, vector<128x128xbf16>
    %c0_5 = arith.constant 0 : index
    %c0_6 = arith.constant 0 : index
    %3 = vector.load %arg7[%c0_5, %c0_6] : memref<128x128xbf16, #tpu.memory_space<vmem>>, vector<128x128xbf16>
    %c0_7 = arith.constant 0 : index
    %c0_8 = arith.constant 0 : index
    %4 = vector.load %arg9[%c0_7, %c0_8] : memref<128x128xbf16, #tpu.memory_space<vmem>>, vector<128x128xbf16>
    %c0_9 = arith.constant 0 : index
    %c0_10 = arith.constant 0 : index
    %5 = vector.load %arg5[%c0_9, %c0_10] : memref<1x128xf32, #tpu.memory_space<vmem>>, vector<1x128xf32>
    %c0_11 = arith.constant 0 : index
    %c0_12 = arith.constant 0 : index
    %6 = vector.load %arg8[%c0_11, %c0_12] : memref<1x128xf32, #tpu.memory_space<vmem>>, vector<1x128xf32>
    %c0_13 = arith.constant 0 : index
    %c0_14 = arith.constant 0 : index
    %7 = vector.load %arg10[%c0_13, %c0_14] : memref<1x128xf32, #tpu.memory_space<vmem>>, vector<1x128xf32>
    %c0_15 = arith.constant 0 : index
    %c0_16 = arith.constant 0 : index
    %8 = vector.load %arg0[%c0_15, %c0_16] : memref<1x128xf32, #tpu.memory_space<vmem>>, vector<1x128xf32>
    %c0_17 = arith.constant 0 : index
    %c0_18 = arith.constant 0 : index
    %9 = vector.load %arg1[%c0_17, %c0_18] : memref<1x128xf32, #tpu.memory_space<vmem>>, vector<1x128xf32>
    %c0_19 = arith.constant 0 : index
    %c0_20 = arith.constant 0 : index
    %10 = vector.load %arg2[%c0_19, %c0_20] : memref<1x128xf32, #tpu.memory_space<vmem>>, vector<1x128xf32>
    %c0_i32 = arith.constant 0 : i32
    %11 = arith.truncf %9 : vector<1x128xf32> to vector<1x128xbf16>
    %cst = arith.constant dense<0.000000e+00> : vector<1x128xf32>
    %12 = tpu.matmul %11, %1, %cst {dimension_numbers = #tpu.dot_dimension_numbers<[1], [0], [0], [1], [0, 0, 1, 1], [], []>} : vector<1x128xbf16>, vector<128x128xbf16>, vector<1x128xf32> -> vector<1x128xf32>
    %13 = arith.truncf %10 : vector<1x128xf32> to vector<1x128xbf16>
    %cst_21 = arith.constant dense<0.000000e+00> : vector<1x128xf32>
    %14 = tpu.matmul %13, %3, %cst_21 {dimension_numbers = #tpu.dot_dimension_numbers<[1], [0], [0], [1], [0, 0, 1, 1], [], []>} : vector<1x128xbf16>, vector<128x128xbf16>, vector<1x128xf32> -> vector<1x128xf32>
    %15 = arith.truncf %8 : vector<1x128xf32> to vector<1x128xbf16>
    %cst_22 = arith.constant dense<0.000000e+00> : vector<1x128xf32>
    %16 = tpu.matmul %15, %0, %cst_22 {dimension_numbers = #tpu.dot_dimension_numbers<[1], [0], [0], [1], [0, 0, 1, 1], [], []>} : vector<1x128xbf16>, vector<128x128xbf16>, vector<1x128xf32> -> vector<1x128xf32>
    %17 = arith.addf %16, %12 : vector<1x128xf32>
    %18 = arith.addf %17, %5 : vector<1x128xf32>
    %19 = math.tanh %18 : vector<1x128xf32>
    %20 = arith.truncf %19 : vector<1x128xf32> to vector<1x128xbf16>
    %cst_23 = arith.constant dense<0.000000e+00> : vector<1x128xf32>
    %21 = tpu.matmul %20, %2, %cst_23 {dimension_numbers = #tpu.dot_dimension_numbers<[1], [0], [0], [1], [0, 0, 1, 1], [], []>} : vector<1x128xbf16>, vector<128x128xbf16>, vector<1x128xf32> -> vector<1x128xf32>
    %22 = arith.addf %21, %14 : vector<1x128xf32>
    %23 = arith.addf %22, %6 : vector<1x128xf32>
    %24 = math.tanh %23 : vector<1x128xf32>
    %25 = arith.truncf %24 : vector<1x128xf32> to vector<1x128xbf16>
    %cst_24 = arith.constant dense<0.000000e+00> : vector<1x128xf32>
    %26 = tpu.matmul %25, %4, %cst_24 {dimension_numbers = #tpu.dot_dimension_numbers<[1], [0], [0], [1], [0, 0, 1, 1], [], []>} : vector<1x128xbf16>, vector<128x128xbf16>, vector<1x128xf32> -> vector<1x128xf32>
    %27 = arith.addf %26, %7 : vector<1x128xf32>
    %28 = arith.index_cast %c0_i32 : i32 to index
    %c0_25 = arith.constant 0 : index
    %29 = vector.load %arg11[%28, %c0_25] : memref<1x128xf32, #tpu.memory_space<vmem>>, vector<1x128xf32>
    tpu.vector_store %arg11[%28, %c0_25], %27 {strides = array<i32>} : memref<1x128xf32, #tpu.memory_space<vmem>>, vector<1x128xf32>,
    %c1_i32 = arith.constant 1 : i32
    %c0_26 = arith.constant 0 : index
    %c0_27 = arith.constant 0 : index
    %30 = vector.load %arg12[%c0_26, %c0_27] : memref<1x128xf32, #tpu.memory_space<vmem>>, vector<1x128xf32>
    tpu.vector_store %arg12[%c0_26, %c0_27], %19 {strides = array<i32>} : memref<1x128xf32, #tpu.memory_space<vmem>>, vector<1x128xf32>,
    %c0_28 = arith.constant 0 : index
    %c0_29 = arith.constant 0 : index
    %31 = vector.load %arg13[%c0_28, %c0_29] : memref<1x128xf32, #tpu.memory_space<vmem>>, vector<1x128xf32>
    tpu.vector_store %arg13[%c0_28, %c0_29], %24 {strides = array<i32>} : memref<1x128xf32, #tpu.memory_space<vmem>>, vector<1x128xf32>,
    return
  }
}

</mosaic_0001>

<bundles_post_ra>
// kernel: tpu_custom_call.1
= control target key start
LH: loop header
LB: loop body
LE: loop exit
PB: predicated region body
PF: predicated region fallthrough
CT: control target
= control target key end

     0   :  { %19 = vsyncpa [#allocation3], 0  ;;  %s1430_s0 = inlined_call_operand.hbm [shape: f32[1,128], index: 0, kind: input, shape index: {}]   ;;  %s1431_s1 = inlined_call_operand.vmem [shape: f32[1,128], index: 1, kind: input, shape index: {}]   ;;  %s1432_s2 = inlined_call_operand.vmem [shape: f32[1,128], index: 2, kind: input, shape index: {}]   ;;  %s1433_s3 = inlined_call_operand.hbm [shape: bf16[128,128], index: 3, kind: input, shape index: {}]   ;;  %s1434_s4 = inlined_call_operand.hbm [shape: bf16[128,128], index: 4, kind: input, shape index: {}]   ;;  %s1435_s5 = inlined_call_operand.vmem [shape: f32[1,128], index: 5, kind: input, shape index: {}]   ;;  %s1436_s6 = inlined_call_operand.hbm [shape: bf16[128,128], index: 6, kind: input, shape index: {}]   ;;  %s1437_s7 = inlined_call_operand.hbm [shape: bf16[128,128], index: 7, kind: input, shape index: {}]   ;;  %s1438_s8 = inlined_call_operand.vmem [shape: f32[1,128], index: 8, kind: input, shape index: {}]   ;;  %s1439_s9 = inlined_call_operand.hbm [shape: bf16[128,128], index: 9, kind: input, shape index: {}]   ;;  %s1440_s10 = inlined_call_operand.vmem [shape: f32[1,128], index: 10, kind: input, shape index: {}]   ;;  %s1441_s11 = inlined_call_operand.hbm [shape: f32[1,128], index: 11, kind: output, shape index: {0}]   ;;  %s1442_s12 = inlined_call_operand.hbm [shape: f32[1,128], index: 12, kind: output, shape index: {1}]   ;;  %s1443_s13 = inlined_call_operand.hbm [shape: f32[1,128], index: 13, kind: output, shape index: {2}]  }
   0x1   :  { %20 = vsyncpa [#allocation6], 0 }
   0x2   :  { %21 = vsyncpa [#allocation9], 0 }
   0x3   :  { %22 = vsyncpa [#allocation12], 0 }
   0x4   :  { %23 = vsyncpa [#allocation4], 0 }
   0x5   :  { %24 = vsyncpa [#allocation15], 0  ;;  %s1159_s25 = smov [#allocation5]   ;;  %s949_s29 = scalar_lea.hbm %s1433_s3, 1024 }
   0x6   :  { %s44_s26 = sshll.u32 %s1159_s25, 4  ;;  %p950_p0 = scmp.ne.s32.totalorder %s1433_s3, %s949_s29  ;;  %s45_s26 = int_to_ptr.vmem [resolvable:$true] %s44_s26 }
   0x7   :  { %p953_p1 = scmp.lt.u32.totalorder %s949_s29, %s1433_s3 }
   0x9   :  { %p955_p2 = pnand %p953_p1, %p950_p0 }
   0xb   :  { %958 = shalt.err (!%p955_p2)
}
   0xc   :  { %s959_s17 = scalar_lea.vmem %s45_s26, 1024  ;;  %p964_p4 = scmp.lt.s32.totalorder %s45_s26, %s45_s26 }
   0xd   :  { %p960_p3 = scmp.ne.s32.totalorder %s45_s26, %s959_s17  ;;  %p965_p5 = scmp.lt.s32.totalorder %s959_s17, %s959_s17 }
   0xf   :  { %p966_p6 = por %p965_p5, %p964_p4 }
  0x11   :  { %p967_p7 = pnand %p966_p6, %p960_p3 }
  0x13   :  { %970 = shalt.err (!%p967_p7)
}
  0x14   :  { %s1160_s18 = smov 64   ;;  %s1161_s19 = smov 4  }
  0x15   :  { %50 = dma.hbm_to_vmem [thread:$0]  %s1433_s3, 1024, %s45_s26, [#allocation6], %s1160_s18, %s1160_s18, %s1161_s19  }
  0x16   :  { %s1162_s22 = smov [#allocation8]   ;;  %s1163_s24 = smov [#allocation2]  }
  0x17   :  { %s70_s23 = sshll.u32 %s1162_s22, 4  ;;  %s31_s25 = sshll.u32 %s1163_s24, 4  ;;  %s71_s23 = int_to_ptr.vmem [resolvable:$true] %s70_s23  ;;  %s32_s25 = int_to_ptr.vmem [resolvable:$true] %s31_s25 }
  0x18   :  { %s971_s29 = scalar_lea.hbm %s1436_s6, 1024 }
  0x19   :  { %p972_p8 = scmp.ne.s32.totalorder %s1436_s6, %s971_s29  ;;  %p975_p9 = scmp.lt.u32.totalorder %s971_s29, %s1436_s6 }
  0x1b   :  { %p977_p10 = pnand %p975_p9, %p972_p8 }
  0x1d   :  { %980 = shalt.err (!%p977_p10)
}
  0x1e   :  { %s981_s3 = scalar_lea.vmem %s71_s23, 1024  ;;  %p986_p12 = scmp.lt.s32.totalorder %s71_s23, %s71_s23 }
  0x1f   :  { %p982_p11 = scmp.ne.s32.totalorder %s71_s23, %s981_s3  ;;  %p987_p13 = scmp.lt.s32.totalorder %s981_s3, %s981_s3 }
  0x21   :  { %p988_p0 = por %p987_p13, %p986_p12 }
  0x23   :  { %p989_p1 = pnand %p988_p0, %p982_p11 }
  0x25   :  { %992 = shalt.err (!%p989_p1)
}
  0x26   :  { %76 = dma.hbm_to_vmem [thread:$0]  %s1436_s6, 1024, %s71_s23, [#allocation9], %s1160_s18, %s1160_s18, %s1161_s19  }
  0x27   :  { %s993_s22 = scalar_lea.hbm %s1430_s0, 16 }
  0x28   :  { %p994_p2 = scmp.ne.s32.totalorder %s1430_s0, %s993_s22  ;;  %p997_p3 = scmp.lt.u32.totalorder %s993_s22, %s1430_s0 }
  0x2a   :  { %p999_p4 = pnand %p997_p3, %p994_p2 }
  0x2c   :  { %1002 = shalt.err (!%p999_p4)
}
  0x2d   :  { %s1003_s30 = scalar_lea.vmem %s32_s25, 16  ;;  %s1007_s14 = scalar_lea.vmem %s32_s25, 32 }
  0x2e   :  { %p1004_p5 = scmp.ne.s32.totalorder %s32_s25, %s1003_s30  ;;  %p1008_p6 = scmp.lt.s32.totalorder %s32_s25, %s32_s25 }
  0x2f   :  { %p1009_p7 = scmp.lt.s32.totalorder %s1007_s14, %s1003_s30 }
  0x31   :  { %p1010_p8 = por %p1009_p7, %p1008_p6 }
  0x33   :  { %p1011_p9 = pnand %p1010_p8, %p1004_p5 }
  0x35   :  { %1014 = shalt.err (!%p1011_p9)
}
  0x36   :  { %34 = dma.hbm_to_vmem [thread:$0]  %s1430_s0, 16, %s32_s25, [#allocation3]  }
  0x37   :  { %s1164_s15 = smov [#allocation7]   ;;  %s1165_s3 = smov [#allocation10]  }
  0x38   :  { %s56_s16 = sshll.u32 %s1164_s15, 4  ;;  %s82_s26 = sshll.u32 %s1165_s3, 4  ;;  %s57_s16 = int_to_ptr.vmem [resolvable:$true] %s56_s16  ;;  %s83_s26 = int_to_ptr.vmem [resolvable:$true] %s82_s26 }
  0x39   :  { %s1015_s21 = scalar_lea.hbm %s1434_s4, 1024 }
  0x3a   :  { %p1016_p10 = scmp.ne.s32.totalorder %s1434_s4, %s1015_s21  ;;  %p1019_p11 = scmp.lt.u32.totalorder %s1015_s21, %s1434_s4 }
  0x3c   :  { %p1021_p12 = pnand %p1019_p11, %p1016_p10 }
  0x3e   :  { %1024 = shalt.err (!%p1021_p12)
}
  0x3f   :  { %s1025_s0 = scalar_lea.vmem %s57_s16, 1024  ;;  %p1030_p0 = scmp.lt.s32.totalorder %s57_s16, %s57_s16 }
  0x40   :  { %p1026_p13 = scmp.ne.s32.totalorder %s57_s16, %s1025_s0  ;;  %p1031_p1 = scmp.lt.s32.totalorder %s1025_s0, %s1025_s0 }
  0x42   :  { %p1032_p2 = por %p1031_p1, %p1030_p0 }
  0x44   :  { %p1033_p3 = pnand %p1032_p2, %p1026_p13 }
  0x46   :  { %1036 = shalt.err (!%p1033_p3)
}
  0x47   :  { %62 = dma.hbm_to_vmem [thread:$0]  %s1434_s4, 1024, %s57_s16, [#allocation6], %s1160_s18, %s1160_s18, %s1161_s19  }
  0x48   :  { %s1037_s6 = scalar_lea.hbm %s1437_s7, 1024 }
  0x49   :  { %p1038_p4 = scmp.ne.s32.totalorder %s1437_s7, %s1037_s6  ;;  %p1041_p5 = scmp.lt.u32.totalorder %s1037_s6, %s1437_s7 }
  0x4b   :  { %p1043_p6 = pnand %p1041_p5, %p1038_p4 }
  0x4d   :  { %1046 = shalt.err (!%p1043_p6)
}
  0x4e   :  { %s1047_s20 = scalar_lea.vmem %s83_s26, 1024  ;;  %p1052_p8 = scmp.lt.s32.totalorder %s83_s26, %s83_s26 }
  0x4f   :  { %p1048_p7 = scmp.ne.s32.totalorder %s83_s26, %s1047_s20  ;;  %p1053_p9 = scmp.lt.s32.totalorder %s1047_s20, %s1047_s20 }
  0x51   :  { %p1054_p10 = por %p1053_p9, %p1052_p8 }
  0x53   :  { %p1055_p11 = pnand %p1054_p10, %p1048_p7 }
  0x55   :  { %1058 = shalt.err (!%p1055_p11)
}
  0x56   :  { %88 = dma.hbm_to_vmem [thread:$0]  %s1437_s7, 1024, %s83_s26, [#allocation9], %s1160_s18, %s1160_s18, %s1161_s19  }
  0x57   :  { %s1166_s21 = smov [#allocation11]   ;;  %s1059_s28 = scalar_lea.hbm %s1439_s9, 1024 }
  0x58   :  { %s96_s22 = sshll.u32 %s1166_s21, 4  ;;  %p1060_p12 = scmp.ne.s32.totalorder %s1439_s9, %s1059_s28  ;;  %s97_s22 = int_to_ptr.vmem [resolvable:$true] %s96_s22 }
  0x59   :  { %p1063_p13 = scmp.lt.u32.totalorder %s1059_s28, %s1439_s9 }
  0x5b   :  { %p1065_p0 = pnand %p1063_p13, %p1060_p12 }
  0x5d   :  { %1068 = shalt.err (!%p1065_p0)
}
  0x5e   :  { %s1069_s14 = scalar_lea.vmem %s97_s22, 1024  ;;  %p1074_p2 = scmp.lt.s32.totalorder %s97_s22, %s97_s22 }
  0x5f   :  { %p1070_p1 = scmp.ne.s32.totalorder %s97_s22, %s1069_s14  ;;  %p1075_p3 = scmp.lt.s32.totalorder %s1069_s14, %s1069_s14 }
  0x61   :  { %p1076_p4 = por %p1075_p3, %p1074_p2 }
  0x63   :  { %p1077_p5 = pnand %p1076_p4, %p1070_p1 }
  0x65   :  { %1080 = shalt.err (!%p1077_p5)
}
  0x66   :  { %102 = dma.hbm_to_vmem [thread:$0]  %s1439_s9, 1024, %s97_s22, [#allocation12], %s1160_s18, %s1160_s18, %s1161_s19  }
  0x67   :  { %1147 = dma.done.wait [#allocation3], 16  }
  0x68   :  { %1148 = vsyncadd [#allocation3], 4294967280 }
  0x69   :  { %1149 = dma.done.wait [#allocation6], 2048  }
  0x6a   :  { %1150 = vsyncadd [#allocation6], 4294965248 }
  0x6b   :  { %1151 = dma.done.wait [#allocation9], 2048  }
  0x6c   :  { %1152 = vsyncadd [#allocation9], 4294965248 }
  0x6d   :  { %1153 = dma.done.wait [#allocation12], 1024  }
  0x6e   :  { %1154 = vsyncadd [#allocation12], 4294966272  ;;  %v1167_v0 = vmov 0.0   ;;  %vm1168_vm0 = vmmov 0   ;;  %v905_v1 = vld [vmem:[#allocation7] sm:$0xff]   ;;  %v906_v2 = vld [vmem:[#allocation7 + $0x8] sm:$0xff]  }
  0x6f   :  { %792 = vmatprep.subr.bf16.mxu0 %v1167_v0  ;;  %808 = vmatprep.mubr.msk.bf16.mxu0 %vm1168_vm0, %v1167_v0  ;;  %v907_v3 = vld [vmem:[#allocation7 + $0x10] sm:$0xff]   ;;  %v908_v4 = vld [vmem:[#allocation7 + $0x18] sm:$0xff]   ;;  %v909_v5 = vld [vmem:[#allocation7 + $0x20] sm:$0xff]   ;;  %s1169_s15 = smov [#allocation14]  }
  0x70   :  { %812 = vmatprep.subr.bf16.mxu1 %v1167_v0  ;;  %828 = vmatprep.mubr.msk.bf16.mxu1 %vm1168_vm0, %v1167_v0  ;;  %v921_v6 = vld [vmem:[#allocation10] sm:$0xff]   ;;  %v910_v7 = vld [vmem:[#allocation7 + $0x28] sm:$0xff]   ;;  %v911_v9 = vld [vmem:[#allocation7 + $0x30] sm:$0xff]   ;;  %s678_s3 = sshll.u32 %s1169_s15, 4  ;;  %s679_s3 = int_to_ptr.vmem [resolvable:$true] %s678_s3 }
  0x71   :  { %793 = vmatpush3.bf16.msra.mxu0 %v905_v1  ;;  %813 = vmatpush3.bf16.msra.mxu1 %v921_v6  ;;  %v922_v8 = vld [vmem:[#allocation10 + $0x8] sm:$0xff]   ;;  %v923_v10 = vld [vmem:[#allocation10 + $0x10] sm:$0xff]   ;;  %v912_v11 = vld [vmem:[#allocation7 + $0x38] sm:$0xff]   ;;  %s1081_s17 = scalar_lea.vmem %s679_s3, 16  ;;  %s1085_s20 = scalar_lea.vmem %s679_s3, 32 }
  0x72   :  { %794 = vmatprep.subr.bf16.mxu0 %v1167_v0  ;;  %814 = vmatprep.subr.bf16.mxu1 %v1167_v0  ;;  %v208_v12 = vld [vmem:[%s1431_s1] sm:$0x1]  ;;  %v913_v14 = vld [vmem:[#allocation5] sm:$0xff]   ;;  %v914_v16 = vld [vmem:[#allocation5 + $0x8] sm:$0xff]   ;;  %p1082_p6 = scmp.ne.s32.totalorder %s679_s3, %s1081_s17  ;;  %p1086_p7 = scmp.lt.s32.totalorder %s679_s3, %s679_s3 }
  0x73   :  { %v924_v13 = vld [vmem:[#allocation10 + $0x18] sm:$0xff]   ;;  %v210_v15 = vpack.c.bf16 %v208_v12, %v208_v12  ;;  %v915_v17 = vld [vmem:[#allocation5 + $0x10] sm:$0xff]   ;;  %v917_v19 = vld [vmem:[#allocation5 + $0x20] sm:$0xff]   ;;  %p1087_p8 = scmp.lt.s32.totalorder %s1085_s20, %s1081_s17 }
  0x74   :  { %v916_v18 = vld [vmem:[#allocation5 + $0x18] sm:$0xff]   ;;  %v918_v20 = vld [vmem:[#allocation5 + $0x28] sm:$0xff]   ;;  %v919_v21 = vld [vmem:[#allocation5 + $0x30] sm:$0xff]  }
  0x75   :  { %795 = vmatpush3.bf16.msra.mxu0 %v906_v2  ;;  %815 = vmatpush3.bf16.msra.mxu1 %v922_v8  ;;  %v920_v22 = vld [vmem:[#allocation5 + $0x38] sm:$0xff]   ;;  %v925_v25 = vld [vmem:[#allocation10 + $0x20] sm:$0xff]   ;;  %v926_v26 = vld [vmem:[#allocation10 + $0x28] sm:$0xff]   ;;  %p1088_p9 = por %p1087_p8, %p1086_p7 }
  0x76   :  { %796 = vmatprep.subr.bf16.mxu0 %v1167_v0  ;;  %816 = vmatprep.subr.bf16.mxu1 %v1167_v0  ;;  %v207_v23 = vld [vmem:[#allocation2] sm:$0x1]  ;;  %v927_v27 = vld [vmem:[#allocation10 + $0x30] sm:$0xff]   ;;  %v929_v31 = vld [vmem:[#allocation8] sm:$0xff]  }
  0x77   :  { %v388_v24 = vpack.c.bf16 %v207_v23, %v207_v23  ;;  %v928_v28 = vld [vmem:[#allocation10 + $0x38] sm:$0xff]   ;;  %v930_v32 = vld [vmem:[#allocation8 + $0x8] sm:$0xff]   ;;  %v931_v33 = vld [vmem:[#allocation8 + $0x10] sm:$0xff]   ;;  %p1089_p10 = pnand %p1088_p9, %p1082_p6 }
  0x78   :  { %v209_v29 = vld [vmem:[%s1432_s2] sm:$0x1]  ;;  %v933_v35 = vld [vmem:[#allocation8 + $0x20] sm:$0xff]   ;;  %v934_v36 = vld [vmem:[#allocation8 + $0x28] sm:$0xff]  }
  0x79   :  { %797 = vmatpush3.bf16.msra.mxu0 %v907_v3  ;;  %817 = vmatpush3.bf16.msra.mxu1 %v923_v10  ;;  %v299_v30 = vpack.c.bf16 %v209_v29, %v209_v29  ;;  %v932_v34 = vld [vmem:[#allocation8 + $0x18] sm:$0xff]   ;;  %v935_v37 = vld [vmem:[#allocation8 + $0x30] sm:$0xff]   ;;  %v937_v39 = vld [vmem:[#allocation11] sm:$0xff]  }
  0x7a   :  { %798 = vmatprep.subr.bf16.mxu0 %v1167_v0  ;;  %818 = vmatprep.subr.bf16.mxu1 %v1167_v0  ;;  %v936_v38 = vld [vmem:[#allocation8 + $0x38] sm:$0xff]   ;;  %v938_v40 = vld [vmem:[#allocation11 + $0x8] sm:$0xff]   ;;  %v939_v41 = vld [vmem:[#allocation11 + $0x10] sm:$0xff]  }
  0x7b   :  { %v940_v42 = vld [vmem:[#allocation11 + $0x18] sm:$0xff]   ;;  %v941_v60 = vld [vmem:[#allocation11 + $0x20] sm:$0xff]   ;;  %v942_v61 = vld [vmem:[#allocation11 + $0x28] sm:$0xff]  }
  0x7c   :  { %v204_v47 = vld [vmem:[%s1435_s5] sm:$0x1]  ;;  %v943_v62 = vld [vmem:[#allocation11 + $0x30] sm:$0xff]  }
  0x7d   :  { %799 = vmatpush3.bf16.msra.mxu0 %v908_v4  ;;  %819 = vmatpush3.bf16.msra.mxu1 %v924_v13  ;;  %v944_v63 = vld [vmem:[#allocation11 + $0x38] sm:$0xff]  }
  0x7e   :  { %800 = vmatprep.subr.bf16.mxu0 %v1167_v0  ;;  %820 = vmatprep.subr.bf16.mxu1 %v1167_v0  ;;  %v205_v1 = vld [vmem:[%s1438_s8] sm:$0x1] }
  0x81   :  { %801 = vmatpush3.bf16.msra.mxu0 %v909_v5  ;;  %821 = vmatpush3.bf16.msra.mxu1 %v925_v25 }
  0x82   :  { %802 = vmatprep.subr.bf16.mxu0 %v1167_v0  ;;  %822 = vmatprep.subr.bf16.mxu1 %v1167_v0 }
  0x85   :  { %803 = vmatpush3.bf16.msra.mxu0 %v910_v7  ;;  %823 = vmatpush3.bf16.msra.mxu1 %v926_v26 }
  0x86   :  { %804 = vmatprep.subr.bf16.mxu0 %v1167_v0  ;;  %824 = vmatprep.subr.bf16.mxu1 %v1167_v0 }
  0x89   :  { %805 = vmatpush3.bf16.msra.mxu0 %v911_v9  ;;  %825 = vmatpush3.bf16.msra.mxu1 %v927_v27 }
  0x8a   :  { %806 = vmatprep.subr.bf16.mxu0 %v1167_v0  ;;  %826 = vmatprep.subr.bf16.mxu1 %v1167_v0 }
  0x8d   :  { %807 = vmatpush3.bf16.msra.mxu0 %v912_v11  ;;  %827 = vmatpush3.bf16.msra.mxu1 %v928_v28 }
  0x8e   :  { %832 = vmatprep.subr.bf16.mxu0 %v1167_v0  ;;  %852 = vmatprep.subr.bf16.mxu1 %v1167_v0 }
  0x90   :  { %809 = vmatmul.mubr.bf16.vlgmr.msra.gmra.mrb[0].mxu0 %v210_v15  ;;  %829 = vmatmul.mubr.bf16.vlgmr.msra.gmra.mrb[0].mxu1 %v299_v30 }
  0x91   :  { %833 = vmatpush3.bf16.msra.mxu0 %v913_v14  ;;  %848 = vmatprep.mubr.msk.bf16.mxu0 %vm1168_vm0, %v1167_v0 }
  0x92   :  { %834 = vmatprep.subr.bf16.mxu0 %v1167_v0  ;;  %853 = vmatpush3.bf16.msra.mxu1 %v929_v31 }
  0x93   :  { %868 = vmatprep.mubr.msk.bf16.mxu1 %vm1168_vm0, %v1167_v0  ;;  %854 = vmatprep.subr.bf16.mxu1 %v1167_v0 }
  0x95   :  { %835 = vmatpush3.bf16.msra.mxu0 %v914_v16 }
  0x96   :  { %836 = vmatprep.subr.bf16.mxu0 %v1167_v0  ;;  %855 = vmatpush3.bf16.msra.mxu1 %v930_v32 }
  0x97   :  { %856 = vmatprep.subr.bf16.mxu1 %v1167_v0 }
  0x99   :  { %837 = vmatpush3.bf16.msra.mxu0 %v915_v17 }
  0x9a   :  { %838 = vmatprep.subr.bf16.mxu0 %v1167_v0  ;;  %857 = vmatpush3.bf16.msra.mxu1 %v931_v33 }
  0x9b   :  { %858 = vmatprep.subr.bf16.mxu1 %v1167_v0 }
  0x9d   :  { %839 = vmatpush3.bf16.msra.mxu0 %v916_v18 }
  0x9e   :  { %840 = vmatprep.subr.bf16.mxu0 %v1167_v0  ;;  %859 = vmatpush3.bf16.msra.mxu1 %v932_v34 }
  0x9f   :  { %860 = vmatprep.subr.bf16.mxu1 %v1167_v0 }
  0xa1   :  { %841 = vmatpush3.bf16.msra.mxu0 %v917_v19 }
  0xa2   :  { %842 = vmatprep.subr.bf16.mxu0 %v1167_v0  ;;  %861 = vmatpush3.bf16.msra.mxu1 %v933_v35 }
  0xa3   :  { %862 = vmatprep.subr.bf16.mxu1 %v1167_v0 }
  0xa5   :  { %843 = vmatpush3.bf16.msra.mxu0 %v918_v20 }
  0xa6   :  { %844 = vmatprep.subr.bf16.mxu0 %v1167_v0  ;;  %863 = vmatpush3.bf16.msra.mxu1 %v934_v36 }
  0xa7   :  { %864 = vmatprep.subr.bf16.mxu1 %v1167_v0 }
  0xa9   :  { %845 = vmatpush3.bf16.msra.mxu0 %v919_v21 }
  0xaa   :  { %846 = vmatprep.subr.bf16.mxu0 %v1167_v0  ;;  %865 = vmatpush3.bf16.msra.mxu1 %v935_v37 }
  0xab   :  { %866 = vmatprep.subr.bf16.mxu1 %v1167_v0 }
  0xad   :  { %847 = vmatpush3.bf16.msra.mxu0 %v920_v22 }
  0xae   :  { %872 = vmatprep.subr.bf16.mxu0 %v1167_v0  ;;  %867 = vmatpush3.bf16.msra.mxu1 %v936_v38 }
  0xb0   :  { %849 = vmatmul.mubr.bf16.vlgmr.msra.gmra.mrb[4].mxu0 %v388_v24 }
  0xb1   :  { %888 = vmatprep.mubr.msk.bf16.mxu0 %vm1168_vm0, %v1167_v0  ;;  %873 = vmatpush3.bf16.msra.mxu0 %v937_v39 }
  0xb2   :  { %874 = vmatprep.subr.bf16.mxu0 %v1167_v0 }
  0xb5   :  { %875 = vmatpush3.bf16.msra.mxu0 %v938_v40 }
  0xb6   :  { %876 = vmatprep.subr.bf16.mxu0 %v1167_v0 }
  0xb9   :  { %877 = vmatpush3.bf16.msra.mxu0 %v939_v41 }
  0xba   :  { %878 = vmatprep.subr.bf16.mxu0 %v1167_v0 }
  0xbd   :  { %879 = vmatpush3.bf16.msra.mxu0 %v940_v42 }
  0xbe   :  { %880 = vmatprep.subr.bf16.mxu0 %v1167_v0 }
  0xc1   :  { %881 = vmatpush3.bf16.msra.mxu0 %v941_v60 }
  0xc2   :  { %882 = vmatprep.subr.bf16.mxu0 %v1167_v0 }
  0xc5   :  { %883 = vmatpush3.bf16.msra.mxu0 %v942_v61 }
  0xc6   :  { %884 = vmatprep.subr.bf16.mxu0 %v1167_v0 }
  0xc9   :  { %885 = vmatpush3.bf16.msra.mxu0 %v943_v62 }
  0xca   :  { %886 = vmatprep.subr.bf16.mxu0 %v1167_v0 }
  0xcd   :  { %887 = vmatpush3.bf16.msra.mxu0 %v944_v63 }
 0x163   :  { %v293_v43 = vpop.f32.mrb[0].mxu0  ;;  %v382_v56 = vpop.f32.mrb[0].mxu1 }
 0x164   :  { %v810_v44 = vpop.f32.mrb[1].mxu0  ;;  %v830_v57 = vpop.f32.mrb[1].mxu1 }
 0x165   :  { %v296_v45 = vpop.f32.mrb[2].mxu0  ;;  %v385_v58 = vpop.f32.mrb[2].mxu1 }
 0x166   :  { %v811_v46 = vpop.f32.mrb[3].mxu0  ;;  %v831_v59 = vpop.f32.mrb[3].mxu1 }
 0x183   :  { %v471_v48 = vpop.f32.mrb[4].mxu0 }
 0x184   :  { %v472_v49 = vadd.f32 %v471_v48, %v293_v43  ;;  %v850_v50 = vpop.f32.mrb[5].mxu0 }
 0x185   :  { %v474_v51 = vpop.f32.mrb[6].mxu0 }
 0x186   :  { %v477_v52 = vadd.f32 %v472_v49, %v204_v47  ;;  %v851_v53 = vpop.f32.mrb[7].mxu0 }
 0x188   :  { %945 = vtanh.f32 %v477_v52 }
 0x192   :  { %v946_v54 = vpop.eup %945 }
 0x193   :  { %660 = vst [vmem:[#allocation14] sm:$0x1] %v946_v54  ;;  %v479_v55 = vpack.c.bf16 %v946_v54, %v946_v54 }
 0x195   :  { %869 = vmatmul.mubr.bf16.vlgmr.msra.gmra.mrb[4].mxu1 %v479_v55 }
 0x268   :  { %v562_v2 = vpop.f32.mrb[4].mxu1 }
 0x269   :  { %v563_v3 = vadd.f32 %v562_v2, %v382_v56  ;;  %v870_v4 = vpop.f32.mrb[5].mxu1 }
 0x26a   :  { %v565_v5 = vpop.f32.mrb[6].mxu1 }
 0x26b   :  { %v568_v6 = vadd.f32 %v563_v3, %v205_v1  ;;  %v871_v7 = vpop.f32.mrb[7].mxu1 }
 0x26d   :  { %947 = vtanh.f32 %v568_v6 }
 0x277   :  { %v948_v8 = vpop.eup %947 }
 0x278   :  { %661 = vst [vmem:[#allocation16] sm:$0x1] %v948_v8  ;;  %v570_v9 = vpack.c.bf16 %v948_v8, %v948_v8 }
 0x27a   :  { %889 = vmatmul.mubr.bf16.vlgmr.msra.gmra.mrb[8].mxu0 %v570_v9 }
 0x27b   :  { %1092 = shalt.err (!%p1089_p10)
}
 0x27c   :  { %s1093_s16 = scalar_lea.hbm %s1442_s12, 16 }
 0x27d   :  { %p1094_p11 = scmp.ne.s32.totalorder %s1442_s12, %s1093_s16  ;;  %p1097_p12 = scmp.lt.u32.totalorder %s1093_s16, %s1442_s12 }
 0x27f   :  { %p1099_p13 = pnand %p1097_p12, %p1094_p11 }
 0x281   :  { %1102 = shalt.err (!%p1099_p13)
}
 0x282   :  { %681 = dma.vmem_to_hbm [thread:$0]  %s679_s3, 16, %s1442_s12, [#allocation15]  }
 0x283   :  { %s1170_s25 = smov [#allocation16]  }
 0x284   :  { %s688_s29 = sshll.u32 %s1170_s25, 4  ;;  %s689_s29 = int_to_ptr.vmem [resolvable:$true] %s688_s29 }
 0x285   :  { %s1103_s30 = scalar_lea.vmem %s689_s29, 16  ;;  %s1107_s14 = scalar_lea.vmem %s689_s29, 32 }
 0x286   :  { %p1104_p0 = scmp.ne.s32.totalorder %s689_s29, %s1103_s30  ;;  %p1108_p1 = scmp.lt.s32.totalorder %s689_s29, %s689_s29 }
 0x287   :  { %p1109_p2 = scmp.lt.s32.totalorder %s1107_s14, %s1103_s30 }
 0x289   :  { %p1110_p3 = por %p1109_p2, %p1108_p1 }
 0x28b   :  { %p1111_p4 = pnand %p1110_p3, %p1104_p0 }
 0x28d   :  { %1114 = shalt.err (!%p1111_p4)
}
 0x28e   :  { %s1115_s9 = scalar_lea.hbm %s1443_s13, 16 }
 0x28f   :  { %p1116_p5 = scmp.ne.s32.totalorder %s1443_s13, %s1115_s9  ;;  %p1119_p6 = scmp.lt.u32.totalorder %s1115_s9, %s1443_s13 }
 0x291   :  { %p1121_p7 = pnand %p1119_p6, %p1116_p5 }
 0x293   :  { %1124 = shalt.err (!%p1121_p7)
}
 0x294   :  { %691 = dma.vmem_to_hbm [thread:$0]  %s689_s29, 16, %s1443_s13, [#allocation15]   ;;  %v206_v0 = vld [vmem:[%s1440_s10] sm:$0x1] }
 0x295   :  { %s1171_s15 = smov [#allocation13]  }
 0x296   :  { %s668_s3 = sshll.u32 %s1171_s15, 4  ;;  %s669_s3 = int_to_ptr.vmem [resolvable:$true] %s668_s3 }
 0x297   :  { %s1125_s17 = scalar_lea.vmem %s669_s3, 16  ;;  %s1129_s20 = scalar_lea.vmem %s669_s3, 32 }
 0x298   :  { %p1126_p8 = scmp.ne.s32.totalorder %s669_s3, %s1125_s17  ;;  %p1130_p9 = scmp.lt.s32.totalorder %s669_s3, %s669_s3 }
 0x299   :  { %p1131_p10 = scmp.lt.s32.totalorder %s1129_s20, %s1125_s17 }
 0x29b   :  { %p1132_p11 = por %p1131_p10, %p1130_p9 }
 0x29d   :  { %p1133_p12 = pnand %p1132_p11, %p1126_p8 }
 0x34d   :  { %v653_v10 = vpop.f32.mrb[8].mxu0 }
 0x34e   :  { %v654_v11 = vadd.f32 %v653_v10, %v206_v0  ;;  %v890_v12 = vpop.f32.mrb[9].mxu0 }
 0x34f   :  { %v656_v13 = vpop.f32.mrb[10].mxu0 }
 0x350   :  { %659 = vst [vmem:[#allocation13] sm:$0x1] %v654_v11  ;;  %v891_v14 = vpop.f32.mrb[11].mxu0 }
 0x351   :  { %1136 = shalt.err (!%p1133_p12)
}
 0x352   :  { %s1137_s10 = scalar_lea.hbm %s1441_s11, 16 }
 0x353   :  { %p1138_p13 = scmp.ne.s32.totalorder %s1441_s11, %s1137_s10  ;;  %p1141_p0 = scmp.lt.u32.totalorder %s1137_s10, %s1441_s11 }
 0x355   :  { %p1143_p1 = pnand %p1141_p0, %p1138_p13 }
 0x357   :  { %1146 = shalt.err (!%p1143_p1)
}
 0x358   :  { %671 = dma.vmem_to_hbm [thread:$0]  %s669_s3, 16, %s1441_s11, [#allocation4]  }
 0x359   :  { %1155 = dma.done.wait [#allocation4], 16  }
 0x35a   :  { %1156 = vsyncadd [#allocation4], 4294967280 }
 0x35b   :  { %1157 = dma.done.wait [#allocation15], 32  }
 0x35c   :  { %1158 = vsyncadd [#allocation15], 4294967264 }
 0x35d   :  { %701 = vsyncpa [#allocation3], 1 }
 0x35e   :  { %702 = vsyncpa [#allocation6], 1 }
 0x35f   :  { %703 = vsyncpa [#allocation9], 1 }
 0x360   :  { %704 = vsyncpa [#allocation12], 1 }
 0x361   :  { %705 = vsyncpa [#allocation4], 1 }
 0x362   :  { %706 = vsyncpa [#allocation15], 1 }

</bundles_post_ra>
